<compile_context>
chip_gen: v7x
topology: tpu7x:2x2x1
jax: 0.10.0
libtpu: 0.0.40
codegen_flags: <defaults>
</compile_context>

<pallas_src>
import functools

import jax
import jax.numpy as jnp
from jax.experimental import pallas as pl
from jax.experimental.pallas import tpu as pltpu

IN_DIMS = 7
OUT_DIMS = 1
HIDDEN = [100, 100, 100, 100, 100, 100, 100, 20]   # fc1..fc8 output dims
NUM_LAYERS = 9
PAD = 128            # every feature dim is zero-padded to one 128-lane vreg width
BN_EPS = 1e-5


def _round_up(a, b):
    return (a + b - 1) // b * b


def deepfcnet_kernel(x_ref, w_ref, s_ref, out_ref):
    """Fused forward pass for one (TILE_N, 128) batch tile.

    x_ref  : (TILE_N, 128)   compute_dtype  x zero-padded to 128 features
    w_ref  : (9, 128, 128)   compute_dtype  BN-folded, zero-padded weights (W.T * bn_scale)
    s_ref  : (9, 1, 128)     float32        BN-folded, zero-padded shifts
    out_ref: (TILE_N, 128)   float32        column 0 = sigmoid(fc9(...)), rest is padding
    """
    h = x_ref[...]

    # fc1..fc8 (+ folded BatchNorm1d) + ReLU.  Dropout is identity in eval mode.
    for layer in range(NUM_LAYERS - 1):
        acc = jnp.dot(h, w_ref[layer], preferred_element_type=jnp.float32)
        acc = jnp.maximum(acc + s_ref[layer], 0.0)       # f32 elementwise
        h = acc.astype(w_ref.dtype)                      # back to matmul dtype

    # fc9 + sigmoid.  Padded lanes come out as sigmoid(0) = 0.5 and are sliced
    # off in the wrapper; the (TILE_N, 128) store stays lane-dense.
    acc = jnp.dot(h, w_ref[NUM_LAYERS - 1], preferred_element_type=jnp.float32)
    out_ref[...] = jax.nn.sigmoid(acc + s_ref[NUM_LAYERS - 1])


def _fold_and_pad_params(params, compute_dtype):
    """Fold BN into each Linear, zero-pad to 128-wide, and stack into slabs."""
    w_rows, s_rows = [], []
    for layer in range(1, NUM_LAYERS + 1):
        w = params[f"fc{layer}_w"].astype(jnp.float32).T            # (d_in, d_out)
        b = params[f"fc{layer}_b"].astype(jnp.float32)
        if layer < NUM_LAYERS:
            scale = params[f"bn{layer}_gamma"] * jax.lax.rsqrt(
                params[f"bn{layer}_var"] + BN_EPS)
            w = w * scale[None, :]
            shift = (b - params[f"bn{layer}_mean"]) * scale + params[f"bn{layer}_beta"]
        else:
            shift = b
        d_in, d_out = w.shape
        w_rows.append(jnp.zeros((PAD, PAD), jnp.float32).at[:d_in, :d_out].set(w))
        s_rows.append(jnp.zeros((PAD,), jnp.float32).at[:d_out].set(shift))
    w_slab = jnp.stack(w_rows).astype(compute_dtype)                # (9, 128, 128)
    s_slab = jnp.stack(s_rows)[:, None, :]                          # (9, 1, 128) f32
    return w_slab, s_slab


@functools.partial(jax.jit, static_argnames=("tile_n", "compute_dtype"))
def deepfcnet_forward(x, params, *, tile_n=512, compute_dtype=jnp.bfloat16):
    n = x.shape[0]
    w_slab, s_slab = _fold_and_pad_params(params, compute_dtype)

    # Batch tiling: rows stream through VMEM in double-buffered (tile_n, 128) blocks.
    tile_n = min(tile_n, _round_up(n, 8))
    n_pad = _round_up(n, tile_n)
    x_p = (jnp.zeros((n_pad, PAD), compute_dtype)
           .at[:n, :IN_DIMS].set(x.astype(compute_dtype)))

    grid = (n_pad // tile_n,)
    itemsize = jnp.dtype(compute_dtype).itemsize
    cost = pl.CostEstimate(
        flops=2 * n_pad * NUM_LAYERS * PAD * PAD,
        transcendentals=n_pad * PAD,                      # sigmoid
        bytes_accessed=(n_pad * PAD * (itemsize + 4)      # x in + f32 out
                        + NUM_LAYERS * PAD * PAD * itemsize
                        + NUM_LAYERS * PAD * 4),
    )

    out = pl.pallas_call(
        deepfcnet_kernel,
        out_shape=jax.ShapeDtypeStruct((n_pad, PAD), jnp.float32),
        grid_spec=pltpu.PrefetchScalarGridSpec(
            num_scalar_prefetch=0,
            grid=grid,
            in_specs=[
                pl.BlockSpec((tile_n, PAD), lambda i: (i, 0)),              # x tile
                pl.BlockSpec((NUM_LAYERS, PAD, PAD), lambda i: (0, 0, 0)),  # weights (VMEM-resident)
                pl.BlockSpec((NUM_LAYERS, 1, PAD), lambda i: (0, 0, 0)),    # shifts  (VMEM-resident)
            ],
            out_specs=pl.BlockSpec((tile_n, PAD), lambda i: (i, 0)),
        ),
        compiler_params=pltpu.CompilerParams(
            dimension_semantics=("parallel",)),
        cost_estimate=cost,
    )(x_p, w_slab, s_slab)

    return out[:n, :OUT_DIMS]


def make_params(key):
    """Deterministic parameter construction (shapes match the PyTorch module)."""
    dims = [IN_DIMS] + HIDDEN + [OUT_DIMS]
    params = {}
    keys = jax.random.split(key, 64)
    ki = 0
    for layer in range(NUM_LAYERS):
        d_in, d_out = dims[layer], dims[layer + 1]
        bound = 1.0 / jnp.sqrt(jnp.float32(d_in))
        w = jax.random.uniform(keys[ki], (d_out, d_in), jnp.float32, -bound, bound); ki += 1
        b = jax.random.uniform(keys[ki], (d_out,), jnp.float32, -bound, bound); ki += 1
        params[f"fc{layer + 1}_w"] = w
        params[f"fc{layer + 1}_b"] = b
        if layer < NUM_LAYERS - 1:
            gamma = 1.0 + 0.1 * jax.random.normal(keys[ki], (d_out,), jnp.float32); ki += 1
            beta = 0.1 * jax.random.normal(keys[ki], (d_out,), jnp.float32); ki += 1
            rmean = 0.05 * jax.random.normal(keys[ki], (d_out,), jnp.float32); ki += 1
            rvar = 1.0 + 0.1 * jax.random.uniform(keys[ki], (d_out,), jnp.float32); ki += 1
            params[f"bn{layer + 1}_gamma"] = gamma
            params[f"bn{layer + 1}_beta"] = beta
            params[f"bn{layer + 1}_mean"] = rmean
            params[f"bn{layer + 1}_var"] = rvar
    return params


def reference_forward(x, params, compute_dtype=jnp.float32):
    """Pure-JAX reference (same BN folding / matmul dtype as the kernel)."""
    h = x.astype(jnp.float32)
    for layer in range(1, NUM_LAYERS):
        w = params[f"fc{layer}_w"].astype(jnp.float32).T
        b = params[f"fc{layer}_b"].astype(jnp.float32)
        scale = params[f"bn{layer}_gamma"] * jax.lax.rsqrt(params[f"bn{layer}_var"] + BN_EPS)
        wf = w * scale[None, :]
        shift = (b - params[f"bn{layer}_mean"]) * scale + params[f"bn{layer}_beta"]
        h = jnp.dot(h.astype(compute_dtype), wf.astype(compute_dtype),
                    preferred_element_type=jnp.float32) + shift
        h = jnp.maximum(h, 0.0)
    wf = params["fc9_w"].astype(jnp.float32).T
    h = jnp.dot(h.astype(compute_dtype), wf.astype(compute_dtype),
                preferred_element_type=jnp.float32) + params["fc9_b"]
    return jax.nn.sigmoid(h)


if __name__ == "__main__":
    key = jax.random.PRNGKey(0)
    k_params, k_x = jax.random.split(key)

    batch = 32
    x = jax.random.normal(k_x, (batch, IN_DIMS), jnp.float32)
    params = make_params(k_params)

    # f32 path: exact eval-mode semantics of the PyTorch module.
    out_f32 = jax.block_until_ready(
        deepfcnet_forward(x, params, compute_dtype=jnp.float32))
    ref_f32 = reference_forward(x, params, compute_dtype=jnp.float32)
    assert out_f32.shape == (batch, OUT_DIMS), out_f32.shape
    assert jnp.allclose(out_f32, ref_f32, atol=5e-5, rtol=5e-5), \
        float(jnp.max(jnp.abs(out_f32 - ref_f32)))

    # bf16-matmul path (MXU-native on v6e/v7x): compare vs matched-precision ref.
    out_bf16 = jax.block_until_ready(
        deepfcnet_forward(x, params, compute_dtype=jnp.bfloat16))
    ref_bf16 = reference_forward(x, params, compute_dtype=jnp.bfloat16)
    assert jnp.allclose(out_bf16, ref_bf16, atol=2e-3, rtol=2e-3), \
        float(jnp.max(jnp.abs(out_bf16 - ref_bf16)))

    print("KERNEL_OK")
</pallas_src>

<mosaic_0001>
module attributes {stable_mosaic.version = 11 : i64} {
  func.func @deepfcnet_kernel(%arg0: i32, %arg1: memref<32x128xf32, #tpu.memory_space<vmem>>, %arg2: memref<9x128x128xf32, #tpu.memory_space<vmem>>, %arg3: memref<9x1x128xf32, #tpu.memory_space<vmem>>, %arg4: memref<32x128xf32, #tpu.memory_space<vmem>>) attributes {dimension_semantics = [#tpu.dimension_semantics<parallel>], iteration_bounds = array<i64: 1>, scalar_prefetch = 0 : i64, scratch_operands = 0 : i64, tpu.core_type = #tpu.core_type<tc>, window_params = [{transform_indices = @transform_0, window_bounds = array<i64: 32, 128>}, {pipeline_mode = #tpu.pipeline_mode<synchronous>, transform_indices = @transform_1, window_bounds = array<i64: 9, 128, 128>}, {pipeline_mode = #tpu.pipeline_mode<synchronous>, transform_indices = @transform_2, window_bounds = array<i64: 9, 1, 128>}, {transform_indices = @transform_3, window_bounds = array<i64: 32, 128>}]} {
    %c0 = arith.constant 0 : index
    %c0_0 = arith.constant 0 : index
    %0 = vector.load %arg1[%c0, %c0_0] : memref<32x128xf32, #tpu.memory_space<vmem>>, vector<32x128xf32>
    %c0_1 = arith.constant 0 : index
    %c0_2 = arith.constant 0 : index
    %c0_3 = arith.constant 0 : index
    %1 = vector.load %arg2[%c0_1, %c0_2, %c0_3] : memref<9x128x128xf32, #tpu.memory_space<vmem>>, vector<1x128x128xf32>
    %2 = vector.shape_cast %1 : vector<1x128x128xf32> to vector<128x128xf32>
    %cst = arith.constant dense<0.000000e+00> : vector<32x128xf32>
    %3 = tpu.matmul %0, %2, %cst {dimension_numbers = #tpu.dot_dimension_numbers<[1], [0], [0], [1], [0, 0, 1, 1], [], []>} : vector<32x128xf32>, vector<128x128xf32>, vector<32x128xf32> -> vector<32x128xf32>
    %c0_4 = arith.constant 0 : index
    %c0_5 = arith.constant 0 : index
    %c0_6 = arith.constant 0 : index
    %4 = vector.load %arg3[%c0_4, %c0_5, %c0_6] : memref<9x1x128xf32, #tpu.memory_space<vmem>>, vector<1x1x128xf32>
    %5 = vector.shape_cast %4 : vector<1x1x128xf32> to vector<1x128xf32>
    %6 = vector.broadcast %5 : vector<1x128xf32> to vector<32x128xf32>
    %7 = arith.addf %3, %6 : vector<32x128xf32>
    %cst_7 = arith.constant 0.000000e+00 : f32
    %8 = vector.broadcast %cst_7 : f32 to vector<32x128xf32>
    %9 = arith.maximumf %7, %8 : vector<32x128xf32>
    %c1 = arith.constant 1 : index
    %c0_8 = arith.constant 0 : index
    %c0_9 = arith.constant 0 : index
    %10 = vector.load %arg2[%c1, %c0_8, %c0_9] : memref<9x128x128xf32, #tpu.memory_space<vmem>>, vector<1x128x128xf32>
    %11 = vector.shape_cast %10 : vector<1x128x128xf32> to vector<128x128xf32>
    %cst_10 = arith.constant dense<0.000000e+00> : vector<32x128xf32>
    %12 = tpu.matmul %9, %11, %cst_10 {dimension_numbers = #tpu.dot_dimension_numbers<[1], [0], [0], [1], [0, 0, 1, 1], [], []>} : vector<32x128xf32>, vector<128x128xf32>, vector<32x128xf32> -> vector<32x128xf32>
    %c1_11 = arith.constant 1 : index
    %c0_12 = arith.constant 0 : index
    %c0_13 = arith.constant 0 : index
    %13 = vector.load %arg3[%c1_11, %c0_12, %c0_13] : memref<9x1x128xf32, #tpu.memory_space<vmem>>, vector<1x1x128xf32>
    %14 = vector.shape_cast %13 : vector<1x1x128xf32> to vector<1x128xf32>
    %15 = vector.broadcast %14 : vector<1x128xf32> to vector<32x128xf32>
    %16 = arith.addf %12, %15 : vector<32x128xf32>
    %cst_14 = arith.constant 0.000000e+00 : f32
    %17 = vector.broadcast %cst_14 : f32 to vector<32x128xf32>
    %18 = arith.maximumf %16, %17 : vector<32x128xf32>
    %c2 = arith.constant 2 : index
    %c0_15 = arith.constant 0 : index
    %c0_16 = arith.constant 0 : index
    %19 = vector.load %arg2[%c2, %c0_15, %c0_16] : memref<9x128x128xf32, #tpu.memory_space<vmem>>, vector<1x128x128xf32>
    %20 = vector.shape_cast %19 : vector<1x128x128xf32> to vector<128x128xf32>
    %cst_17 = arith.constant dense<0.000000e+00> : vector<32x128xf32>
    %21 = tpu.matmul %18, %20, %cst_17 {dimension_numbers = #tpu.dot_dimension_numbers<[1], [0], [0], [1], [0, 0, 1, 1], [], []>} : vector<32x128xf32>, vector<128x128xf32>, vector<32x128xf32> -> vector<32x128xf32>
    %c2_18 = arith.constant 2 : index
    %c0_19 = arith.constant 0 : index
    %c0_20 = arith.constant 0 : index
    %22 = vector.load %arg3[%c2_18, %c0_19, %c0_20] : memref<9x1x128xf32, #tpu.memory_space<vmem>>, vector<1x1x128xf32>
    %23 = vector.shape_cast %22 : vector<1x1x128xf32> to vector<1x128xf32>
    %24 = vector.broadcast %23 : vector<1x128xf32> to vector<32x128xf32>
    %25 = arith.addf %21, %24 : vector<32x128xf32>
    %cst_21 = arith.constant 0.000000e+00 : f32
    %26 = vector.broadcast %cst_21 : f32 to vector<32x128xf32>
    %27 = arith.maximumf %25, %26 : vector<32x128xf32>
    %c3 = arith.constant 3 : index
    %c0_22 = arith.constant 0 : index
    %c0_23 = arith.constant 0 : index
    %28 = vector.load %arg2[%c3, %c0_22, %c0_23] : memref<9x128x128xf32, #tpu.memory_space<vmem>>, vector<1x128x128xf32>
    %29 = vector.shape_cast %28 : vector<1x128x128xf32> to vector<128x128xf32>
    %cst_24 = arith.constant dense<0.000000e+00> : vector<32x128xf32>
    %30 = tpu.matmul %27, %29, %cst_24 {dimension_numbers = #tpu.dot_dimension_numbers<[1], [0], [0], [1], [0, 0, 1, 1], [], []>} : vector<32x128xf32>, vector<128x128xf32>, vector<32x128xf32> -> vector<32x128xf32>
    %c3_25 = arith.constant 3 : index
    %c0_26 = arith.constant 0 : index
    %c0_27 = arith.constant 0 : index
    %31 = vector.load %arg3[%c3_25, %c0_26, %c0_27] : memref<9x1x128xf32, #tpu.memory_space<vmem>>, vector<1x1x128xf32>
    %32 = vector.shape_cast %31 : vector<1x1x128xf32> to vector<1x128xf32>
    %33 = vector.broadcast %32 : vector<1x128xf32> to vector<32x128xf32>
    %34 = arith.addf %30, %33 : vector<32x128xf32>
    %cst_28 = arith.constant 0.000000e+00 : f32
    %35 = vector.broadcast %cst_28 : f32 to vector<32x128xf32>
    %36 = arith.maximumf %34, %35 : vector<32x128xf32>
    %c4 = arith.constant 4 : index
    %c0_29 = arith.constant 0 : index
    %c0_30 = arith.constant 0 : index
    %37 = vector.load %arg2[%c4, %c0_29, %c0_30] : memref<9x128x128xf32, #tpu.memory_space<vmem>>, vector<1x128x128xf32>
    %38 = vector.shape_cast %37 : vector<1x128x128xf32> to vector<128x128xf32>
    %cst_31 = arith.constant dense<0.000000e+00> : vector<32x128xf32>
    %39 = tpu.matmul %36, %38, %cst_31 {dimension_numbers = #tpu.dot_dimension_numbers<[1], [0], [0], [1], [0, 0, 1, 1], [], []>} : vector<32x128xf32>, vector<128x128xf32>, vector<32x128xf32> -> vector<32x128xf32>
    %c4_32 = arith.constant 4 : index
    %c0_33 = arith.constant 0 : index
    %c0_34 = arith.constant 0 : index
    %40 = vector.load %arg3[%c4_32, %c0_33, %c0_34] : memref<9x1x128xf32, #tpu.memory_space<vmem>>, vector<1x1x128xf32>
    %41 = vector.shape_cast %40 : vector<1x1x128xf32> to vector<1x128xf32>
    %42 = vector.broadcast %41 : vector<1x128xf32> to vector<32x128xf32>
    %43 = arith.addf %39, %42 : vector<32x128xf32>
    %cst_35 = arith.constant 0.000000e+00 : f32
    %44 = vector.broadcast %cst_35 : f32 to vector<32x128xf32>
    %45 = arith.maximumf %43, %44 : vector<32x128xf32>
    %c5 = arith.constant 5 : index
    %c0_36 = arith.constant 0 : index
    %c0_37 = arith.constant 0 : index
    %46 = vector.load %arg2[%c5, %c0_36, %c0_37] : memref<9x128x128xf32, #tpu.memory_space<vmem>>, vector<1x128x128xf32>
    %47 = vector.shape_cast %46 : vector<1x128x128xf32> to vector<128x128xf32>
    %cst_38 = arith.constant dense<0.000000e+00> : vector<32x128xf32>
    %48 = tpu.matmul %45, %47, %cst_38 {dimension_numbers = #tpu.dot_dimension_numbers<[1], [0], [0], [1], [0, 0, 1, 1], [], []>} : vector<32x128xf32>, vector<128x128xf32>, vector<32x128xf32> -> vector<32x128xf32>
    %c5_39 = arith.constant 5 : index
    %c0_40 = arith.constant 0 : index
    %c0_41 = arith.constant 0 : index
    %49 = vector.load %arg3[%c5_39, %c0_40, %c0_41] : memref<9x1x128xf32, #tpu.memory_space<vmem>>, vector<1x1x128xf32>
    %50 = vector.shape_cast %49 : vector<1x1x128xf32> to vector<1x128xf32>
    %51 = vector.broadcast %50 : vector<1x128xf32> to vector<32x128xf32>
    %52 = arith.addf %48, %51 : vector<32x128xf32>
    %cst_42 = arith.constant 0.000000e+00 : f32
    %53 = vector.broadcast %cst_42 : f32 to vector<32x128xf32>
    %54 = arith.maximumf %52, %53 : vector<32x128xf32>
    %c6 = arith.constant 6 : index
    %c0_43 = arith.constant 0 : index
    %c0_44 = arith.constant 0 : index
    %55 = vector.load %arg2[%c6, %c0_43, %c0_44] : memref<9x128x128xf32, #tpu.memory_space<vmem>>, vector<1x128x128xf32>
    %56 = vector.shape_cast %55 : vector<1x128x128xf32> to vector<128x128xf32>
    %cst_45 = arith.constant dense<0.000000e+00> : vector<32x128xf32>
    %57 = tpu.matmul %54, %56, %cst_45 {dimension_numbers = #tpu.dot_dimension_numbers<[1], [0], [0], [1], [0, 0, 1, 1], [], []>} : vector<32x128xf32>, vector<128x128xf32>, vector<32x128xf32> -> vector<32x128xf32>
    %c6_46 = arith.constant 6 : index
    %c0_47 = arith.constant 0 : index
    %c0_48 = arith.constant 0 : index
    %58 = vector.load %arg3[%c6_46, %c0_47, %c0_48] : memref<9x1x128xf32, #tpu.memory_space<vmem>>, vector<1x1x128xf32>
    %59 = vector.shape_cast %58 : vector<1x1x128xf32> to vector<1x128xf32>
    %60 = vector.broadcast %59 : vector<1x128xf32> to vector<32x128xf32>
    %61 = arith.addf %57, %60 : vector<32x128xf32>
    %cst_49 = arith.constant 0.000000e+00 : f32
    %62 = vector.broadcast %cst_49 : f32 to vector<32x128xf32>
    %63 = arith.maximumf %61, %62 : vector<32x128xf32>
    %c7 = arith.constant 7 : index
    %c0_50 = arith.constant 0 : index
    %c0_51 = arith.constant 0 : index
    %64 = vector.load %arg2[%c7, %c0_50, %c0_51] : memref<9x128x128xf32, #tpu.memory_space<vmem>>, vector<1x128x128xf32>
    %65 = vector.shape_cast %64 : vector<1x128x128xf32> to vector<128x128xf32>
    %cst_52 = arith.constant dense<0.000000e+00> : vector<32x128xf32>
    %66 = tpu.matmul %63, %65, %cst_52 {dimension_numbers = #tpu.dot_dimension_numbers<[1], [0], [0], [1], [0, 0, 1, 1], [], []>} : vector<32x128xf32>, vector<128x128xf32>, vector<32x128xf32> -> vector<32x128xf32>
    %c7_53 = arith.constant 7 : index
    %c0_54 = arith.constant 0 : index
    %c0_55 = arith.constant 0 : index
    %67 = vector.load %arg3[%c7_53, %c0_54, %c0_55] : memref<9x1x128xf32, #tpu.memory_space<vmem>>, vector<1x1x128xf32>
    %68 = vector.shape_cast %67 : vector<1x1x128xf32> to vector<1x128xf32>
    %69 = vector.broadcast %68 : vector<1x128xf32> to vector<32x128xf32>
    %70 = arith.addf %66, %69 : vector<32x128xf32>
    %cst_56 = arith.constant 0.000000e+00 : f32
    %71 = vector.broadcast %cst_56 : f32 to vector<32x128xf32>
    %72 = arith.maximumf %70, %71 : vector<32x128xf32>
    %c8 = arith.constant 8 : index
    %c0_57 = arith.constant 0 : index
    %c0_58 = arith.constant 0 : index
    %73 = vector.load %arg2[%c8, %c0_57, %c0_58] : memref<9x128x128xf32, #tpu.memory_space<vmem>>, vector<1x128x128xf32>
    %74 = vector.shape_cast %73 : vector<1x128x128xf32> to vector<128x128xf32>
    %cst_59 = arith.constant dense<0.000000e+00> : vector<32x128xf32>
    %75 = tpu.matmul %72, %74, %cst_59 {dimension_numbers = #tpu.dot_dimension_numbers<[1], [0], [0], [1], [0, 0, 1, 1], [], []>} : vector<32x128xf32>, vector<128x128xf32>, vector<32x128xf32> -> vector<32x128xf32>
    %c8_60 = arith.constant 8 : index
    %c0_61 = arith.constant 0 : index
    %c0_62 = arith.constant 0 : index
    %76 = vector.load %arg3[%c8_60, %c0_61, %c0_62] : memref<9x1x128xf32, #tpu.memory_space<vmem>>, vector<1x1x128xf32>
    %77 = vector.shape_cast %76 : vector<1x1x128xf32> to vector<1x128xf32>
    %78 = vector.broadcast %77 : vector<1x128xf32> to vector<32x128xf32>
    %79 = arith.addf %75, %78 : vector<32x128xf32>
    %80 = arith.negf %79 : vector<32x128xf32>
    %81 = math.exp %80 : vector<32x128xf32>
    %cst_63 = arith.constant 1.000000e+00 : f32
    %82 = vector.broadcast %cst_63 : f32 to vector<32x128xf32>
    %83 = arith.addf %82, %81 : vector<32x128xf32>
    %84 = arith.divf %82, %83 : vector<32x128xf32>
    %c0_64 = arith.constant 0 : index
    %c0_65 = arith.constant 0 : index
    %85 = vector.load %arg4[%c0_64, %c0_65] : memref<32x128xf32, #tpu.memory_space<vmem>>, vector<32x128xf32>
    tpu.vector_store %arg4[%c0_64, %c0_65], %84 {strides = array<i32>} : memref<32x128xf32, #tpu.memory_space<vmem>>, vector<32x128xf32>,
    return
  }
  func.func @transform_0(%arg0: i32) -> (i32, i32) {
    %c0_i32 = arith.constant 0 : i32
    %c0_i32_0 = arith.constant 0 : i32
    return %arg0, %c0_i32 : i32, i32
  }
  func.func @transform_1(%arg0: i32) -> (i32, i32, i32) {
    %c0_i32 = arith.constant 0 : i32
    %c0_i32_0 = arith.constant 0 : i32
    %c0_i32_1 = arith.constant 0 : i32
    %c0_i32_2 = arith.constant 0 : i32
    return %c0_i32, %c0_i32_0, %c0_i32_1 : i32, i32, i32
  }
  func.func @transform_2(%arg0: i32) -> (i32, i32, i32) {
    %c0_i32 = arith.constant 0 : i32
    %c0_i32_0 = arith.constant 0 : i32
    %c0_i32_1 = arith.constant 0 : i32
    %c0_i32_2 = arith.constant 0 : i32
    return %c0_i32, %c0_i32_0, %c0_i32_1 : i32, i32, i32
  }
  func.func @transform_3(%arg0: i32) -> (i32, i32) {
    %c0_i32 = arith.constant 0 : i32
    %c0_i32_0 = arith.constant 0 : i32
    return %arg0, %c0_i32 : i32, i32
  }
}

</mosaic_0001>

<bundles_post_ra>
// kernel: deepfcnet_forward.1
= control target key start
LH: loop header
LB: loop body
LE: loop exit
PB: predicated region body
PF: predicated region fallthrough
CT: control target
= control target key end

     0   :  { %s2564_s1 = inlined_call_operand.vmem [shape: f32[9,128,128], index: 1, kind: input, shape index: {}]   ;;  %s2565_s0 = inlined_call_operand.vmem [shape: f32[32,128], index: 0, kind: input, shape index: {}]   ;;  %s2566_s2 = inlined_call_operand.vmem [shape: f32[9,1,128], index: 2, kind: input, shape index: {}]   ;;  %s2567_s3 = inlined_call_operand.vmem [shape: f32[32,128], index: 3, kind: output, shape index: {}]  }
   0x1   :  { %v18_v0 = vld [vmem:[%s2564_s1] sm:$0xff]  ;;  %v19_v1 = vld [vmem:[%s2564_s1 + $0x8] sm:$0xff]  ;;  %v20_v2 = vld [vmem:[%s2564_s1 + $0x10] sm:$0xff] }
   0x2   :  { %v1741_v3 = vpack.c.bf16 %v19_v1, %v18_v0  ;;  %v21_v4 = vld [vmem:[%s2564_s1 + $0x18] sm:$0xff]  ;;  %v22_v6 = vld [vmem:[%s2564_s1 + $0x20] sm:$0xff]  ;;  %v23_v7 = vld [vmem:[%s2564_s1 + $0x28] sm:$0xff] }
   0x3   :  { %v1745_v5 = vpack.c.bf16 %v21_v4, %v20_v2  ;;  %v1749_v8 = vpack.c.bf16 %v23_v7, %v22_v6  ;;  %v14_v9 = vld [vmem:[%s2565_s0] sm:$0xff]  ;;  %v24_v10 = vld [vmem:[%s2564_s1 + $0x30] sm:$0xff]  ;;  %v25_v11 = vld [vmem:[%s2564_s1 + $0x38] sm:$0xff] }
   0x4   :  { %1742 = vmatprep.subr.bf16.mxu0 %v1741_v3  ;;  %1431 = vmatprep.mubr.f32.mxu0 %v14_v9  ;;  %v1071_v12 = vld [vmem:[%s2564_s1 + $0x80] sm:$0xff]  ;;  %v1072_v13 = vld [vmem:[%s2564_s1 + $0x88] sm:$0xff]  ;;  %v1073_v14 = vld [vmem:[%s2564_s1 + $0x90] sm:$0xff]  ;;  %v1753_v18 = vpack.c.bf16 %v25_v11, %v24_v10 }
   0x5   :  { %1744 = vmatpush3.bf16.msra.mxu0 %v1741_v3  ;;  %v1074_v15 = vld [vmem:[%s2564_s1 + $0x98] sm:$0xff]  ;;  %v1773_v16 = vpack.c.bf16 %v1072_v13, %v1071_v12  ;;  %v1075_v19 = vld [vmem:[%s2564_s1 + $0xa0] sm:$0xff]  ;;  %v1076_v20 = vld [vmem:[%s2564_s1 + $0xa8] sm:$0xff] }
   0x6   :  { %1746 = vmatprep.subr.bf16.mxu0 %v1745_v5  ;;  %v1777_v17 = vpack.c.bf16 %v1074_v15, %v1073_v14  ;;  %v26_v21 = vld [vmem:[%s2564_s1 + $0x40] sm:$0xff]  ;;  %v27_v22 = vld [vmem:[%s2564_s1 + $0x48] sm:$0xff]  ;;  %v1781_v23 = vpack.c.bf16 %v1076_v20, %v1075_v19  ;;  %v1077_v25 = vld [vmem:[%s2564_s1 + $0xb0] sm:$0xff] }
   0x7   :  { %1774 = vmatprep.subr.bf16.mxu1 %v1773_v16  ;;  %v1757_v24 = vpack.c.bf16 %v27_v22, %v26_v21  ;;  %v1078_v26 = vld [vmem:[%s2564_s1 + $0xb8] sm:$0xff]  ;;  %v28_v27 = vld [vmem:[%s2564_s1 + $0x50] sm:$0xff]  ;;  %v1079_v31 = vld [vmem:[%s2564_s1 + $0xc0] sm:$0xff] }
   0x8   :  { %1776 = vmatpush3.bf16.msra.mxu1 %v1773_v16  ;;  %v29_v28 = vld [vmem:[%s2564_s1 + $0x58] sm:$0xff]  ;;  %v1785_v29 = vpack.c.bf16 %v1078_v26, %v1077_v25  ;;  %v1080_v32 = vld [vmem:[%s2564_s1 + $0xc8] sm:$0xff]  ;;  %v30_v33 = vld [vmem:[%s2564_s1 + $0x60] sm:$0xff] }
   0x9   :  { %1748 = vmatpush3.bf16.msra.mxu0 %v1745_v5  ;;  %1778 = vmatprep.subr.bf16.mxu1 %v1777_v17  ;;  %v1761_v30 = vpack.c.bf16 %v29_v28, %v28_v27  ;;  %v31_v34 = vld [vmem:[%s2564_s1 + $0x68] sm:$0xff]  ;;  %v1789_v35 = vpack.c.bf16 %v1080_v32, %v1079_v31  ;;  %v1081_v37 = vld [vmem:[%s2564_s1 + $0xd0] sm:$0xff]  ;;  %v1082_v38 = vld [vmem:[%s2564_s1 + $0xd8] sm:$0xff] }
   0xa   :  { %1750 = vmatprep.subr.bf16.mxu0 %v1749_v8  ;;  %v1765_v36 = vpack.c.bf16 %v31_v34, %v30_v33  ;;  %v32_v39 = vld [vmem:[%s2564_s1 + $0x70] sm:$0xff]  ;;  %v33_v40 = vld [vmem:[%s2564_s1 + $0x78] sm:$0xff]  ;;  %v1793_v41 = vpack.c.bf16 %v1082_v38, %v1081_v37  ;;  %v1083_v43 = vld [vmem:[%s2564_s1 + $0xe0] sm:$0xff] }
   0xb   :  { %v1769_v42 = vpack.c.bf16 %v33_v40, %v32_v39  ;;  %v1084_v44 = vld [vmem:[%s2564_s1 + $0xe8] sm:$0xff]  ;;  %v16_v47 = vld [vmem:[%s2565_s0 + $0x10] sm:$0xff]  ;;  %v17_v48 = vld [vmem:[%s2565_s0 + $0x18] sm:$0xff] }
   0xc   :  { %1780 = vmatpush3.bf16.msra.mxu1 %v1777_v17  ;;  %v1797_v45 = vpack.c.bf16 %v1084_v44, %v1083_v43  ;;  %v15_v46 = vld [vmem:[%s2565_s0 + $0x8] sm:$0xff]  ;;  %v1085_v49 = vld [vmem:[%s2564_s1 + $0xf0] sm:$0xff]  ;;  %v1086_v50 = vld [vmem:[%s2564_s1 + $0xf8] sm:$0xff] }
   0xd   :  { %1752 = vmatpush3.bf16.msra.mxu0 %v1749_v8  ;;  %1782 = vmatprep.subr.bf16.mxu1 %v1781_v23  ;;  %v1801_v51 = vpack.c.bf16 %v1086_v50, %v1085_v49  ;;  %v1089_v52 = vld [vmem:[%s2564_s1 + $0x100] sm:$0xff]  ;;  %v1090_v53 = vld [vmem:[%s2564_s1 + $0x108] sm:$0xff]  ;;  %v1091_v54 = vld [vmem:[%s2564_s1 + $0x110] sm:$0xff] }
   0xe   :  { %1754 = vmatprep.subr.bf16.mxu0 %v1753_v18  ;;  %v1805_v55 = vpack.c.bf16 %v1090_v53, %v1089_v52  ;;  %v1092_v56 = vld [vmem:[%s2564_s1 + $0x118] sm:$0xff]  ;;  %v1093_v58 = vld [vmem:[%s2564_s1 + $0x120] sm:$0xff]  ;;  %v1094_v59 = vld [vmem:[%s2564_s1 + $0x128] sm:$0xff] }
   0xf   :  { %v1809_v57 = vpack.c.bf16 %v1092_v56, %v1091_v54  ;;  %v1813_v60 = vpack.c.bf16 %v1094_v59, %v1093_v58  ;;  %v1095_v61 = vld [vmem:[%s2564_s1 + $0x130] sm:$0xff]  ;;  %v1096_v62 = vld [vmem:[%s2564_s1 + $0x138] sm:$0xff]  ;;  %v1097_v0 = vld [vmem:[%s2564_s1 + $0x140] sm:$0xff] }
  0x10   :  { %1784 = vmatpush3.bf16.msra.mxu1 %v1781_v23  ;;  %v1817_v63 = vpack.c.bf16 %v1096_v62, %v1095_v61  ;;  %v1098_v1 = vld [vmem:[%s2564_s1 + $0x148] sm:$0xff]  ;;  %v1099_v3 = vld [vmem:[%s2564_s1 + $0x150] sm:$0xff]  ;;  %v1100_v4 = vld [vmem:[%s2564_s1 + $0x158] sm:$0xff] }
  0x11   :  { %1756 = vmatpush3.bf16.msra.mxu0 %v1753_v18  ;;  %1786 = vmatprep.subr.bf16.mxu1 %v1785_v29  ;;  %v1821_v2 = vpack.c.bf16 %v1098_v1, %v1097_v0  ;;  %v1825_v5 = vpack.c.bf16 %v1100_v4, %v1099_v3  ;;  %v1101_v6 = vld [vmem:[%s2564_s1 + $0x160] sm:$0xff]  ;;  %v1102_v7 = vld [vmem:[%s2564_s1 + $0x168] sm:$0xff]  ;;  %v1103_v22 = vld [vmem:[%s2564_s1 + $0x170] sm:$0xff] }
  0x12   :  { %1758 = vmatprep.subr.bf16.mxu0 %v1757_v24  ;;  %v1829_v8 = vpack.c.bf16 %v1102_v7, %v1101_v6  ;;  %v1070_v9 = vld [vmem:[%s2566_s2] ss:$0 sm:$0xff]  ;;  %v1104_v23 = vld [vmem:[%s2564_s1 + $0x178] sm:$0xff]  ;;  %v1108_v26 = vld [vmem:[%s2564_s1 + $0x188] sm:$0xff] }
  0x13   :  { %v1107_v25 = vld [vmem:[%s2564_s1 + $0x180] sm:$0xff]  ;;  %v1109_v27 = vld [vmem:[%s2564_s1 + $0x190] sm:$0xff]  ;;  %v1112_v32 = vld [vmem:[%s2564_s1 + $0x1a8] sm:$0xff] }
  0x14   :  { %1788 = vmatpush3.bf16.msra.mxu1 %v1785_v29  ;;  %v1837_v28 = vpack.c.bf16 %v1108_v26, %v1107_v25  ;;  %v1110_v29 = vld [vmem:[%s2564_s1 + $0x198] sm:$0xff]  ;;  %v1111_v31 = vld [vmem:[%s2564_s1 + $0x1a0] sm:$0xff]  ;;  %v1113_v34 = vld [vmem:[%s2564_s1 + $0x1b0] sm:$0xff] }
  0x15   :  { %1760 = vmatpush3.bf16.msra.mxu0 %v1757_v24  ;;  %1790 = vmatprep.subr.bf16.mxu1 %v1789_v35  ;;  %v1833_v24 = vpack.c.bf16 %v1104_v23, %v1103_v22  ;;  %v1845_v33 = vpack.c.bf16 %v1112_v32, %v1111_v31  ;;  %v1115_v37 = vld [vmem:[%s2564_s1 + $0x1c0] sm:$0xff]  ;;  %v1116_v38 = vld [vmem:[%s2564_s1 + $0x1c8] sm:$0xff]  ;;  %v1117_v40 = vld [vmem:[%s2564_s1 + $0x1d0] sm:$0xff] }
  0x16   :  { %1762 = vmatprep.subr.bf16.mxu0 %v1761_v30  ;;  %v1853_v39 = vpack.c.bf16 %v1116_v38, %v1115_v37  ;;  %v1119_v43 = vld [vmem:[%s2564_s1 + $0x1e0] sm:$0xff]  ;;  %v1120_v44 = vld [vmem:[%s2564_s1 + $0x1e8] sm:$0xff]  ;;  %v1121_v59 = vld [vmem:[%s2564_s1 + $0x1f0] sm:$0xff] }
  0x17   :  { %v1125_v62 = vld [vmem:[%s2564_s1 + $0x200] sm:$0xff]  ;;  %v1127_v0 = vld [vmem:[%s2564_s1 + $0x210] sm:$0xff] }
  0x18   :  { %1792 = vmatpush3.bf16.msra.mxu1 %v1789_v35  ;;  %v1114_v35 = vld [vmem:[%s2564_s1 + $0x1b8] sm:$0xff]  ;;  %v1129_v4 = vld [vmem:[%s2564_s1 + $0x220] sm:$0xff]  ;;  %v1131_v7 = vld [vmem:[%s2564_s1 + $0x230] sm:$0xff] }
  0x19   :  { %1764 = vmatpush3.bf16.msra.mxu0 %v1761_v30  ;;  %1794 = vmatprep.subr.bf16.mxu1 %v1793_v41  ;;  %v1841_v30 = vpack.c.bf16 %v1110_v29, %v1109_v27  ;;  %v1139_v32 = vld [vmem:[%s2564_s1 + $0x270] sm:$0xff] }
  0x1a   :  { %1766 = vmatprep.subr.bf16.mxu0 %v1765_v36  ;;  %v1145_v37 = vld [vmem:[%s2564_s1 + $0x290] sm:$0xff] }
  0x1c   :  { %1796 = vmatpush3.bf16.msra.mxu1 %v1793_v41  ;;  %v1118_v41 = vld [vmem:[%s2564_s1 + $0x1d8] sm:$0xff] }
  0x1d   :  { %1768 = vmatpush3.bf16.msra.mxu0 %v1765_v36  ;;  %1798 = vmatprep.subr.bf16.mxu1 %v1797_v45  ;;  %v1849_v36 = vpack.c.bf16 %v1114_v35, %v1113_v34  ;;  %v1143_v35 = vld [vmem:[%s2564_s1 + $0x280] sm:$0xff] }
  0x1e   :  { %1770 = vmatprep.subr.bf16.mxu0 %v1769_v42 }
  0x20   :  { %1800 = vmatpush3.bf16.msra.mxu1 %v1797_v45  ;;  %v1861_v45 = vpack.c.bf16 %v1120_v44, %v1119_v43  ;;  %v1149_v44 = vld [vmem:[%s2564_s1 + $0x2b0] sm:$0xff] }
  0x21   :  { %1772 = vmatpush3.bf16.msra.mxu0 %v1769_v42  ;;  %1802 = vmatprep.subr.bf16.mxu1 %v1801_v51  ;;  %v1857_v42 = vpack.c.bf16 %v1118_v41, %v1117_v40  ;;  %v1147_v41 = vld [vmem:[%s2564_s1 + $0x2a0] sm:$0xff] }
  0x22   :  { %1806 = vmatprep.subr.bf16.mxu0 %v1805_v55 }
  0x24   :  { %1432 = vmatmul.mubr.f32.vlgmr.msra.gmra.mrb[0].mxu0 %v15_v46  ;;  %1804 = vmatpush3.bf16.msra.mxu1 %v1801_v51  ;;  %v1088_v46 = vld [vmem:[%s2566_s2 + $0x1] ss:$0 sm:$0xff] }
  0x25   :  { %1434 = vmatprep.mubr.f32.mxu0 %v16_v47  ;;  %1808 = vmatpush3.bf16.msra.mxu0 %v1805_v55 }
  0x26   :  { %1810 = vmatprep.subr.bf16.mxu0 %v1809_v57  ;;  %1838 = vmatprep.subr.bf16.mxu1 %v1837_v28 }
  0x28   :  { %1435 = vmatmul.mubr.f32.gmra.mrb[2].mxu0 %v17_v48 }
  0x29   :  { %1812 = vmatpush3.bf16.msra.mxu0 %v1809_v57 }
  0x2a   :  { %1814 = vmatprep.subr.bf16.mxu0 %v1813_v60 }
  0x2d   :  { %1816 = vmatpush3.bf16.msra.mxu0 %v1813_v60  ;;  %v1122_v60 = vld [vmem:[%s2564_s1 + $0x1f8] sm:$0xff] }
  0x2e   :  { %1818 = vmatprep.subr.bf16.mxu0 %v1817_v63  ;;  %v1865_v61 = vpack.c.bf16 %v1122_v60, %v1121_v59 }
  0x31   :  { %1820 = vmatpush3.bf16.msra.mxu0 %v1817_v63  ;;  %v1126_v63 = vld [vmem:[%s2564_s1 + $0x208] sm:$0xff] }
  0x32   :  { %1822 = vmatprep.subr.bf16.mxu0 %v1821_v2  ;;  %v1869_v1 = vpack.c.bf16 %v1126_v63, %v1125_v62 }
  0x35   :  { %1824 = vmatpush3.bf16.msra.mxu0 %v1821_v2  ;;  %v1128_v2 = vld [vmem:[%s2564_s1 + $0x218] sm:$0xff] }
  0x36   :  { %1826 = vmatprep.subr.bf16.mxu0 %v1825_v5  ;;  %v1873_v3 = vpack.c.bf16 %v1128_v2, %v1127_v0 }
  0x39   :  { %1828 = vmatpush3.bf16.msra.mxu0 %v1825_v5  ;;  %v1130_v5 = vld [vmem:[%s2564_s1 + $0x228] sm:$0xff] }
  0x3a   :  { %1830 = vmatprep.subr.bf16.mxu0 %v1829_v8  ;;  %v1877_v6 = vpack.c.bf16 %v1130_v5, %v1129_v4  ;;  %v1157_v5 = vld [vmem:[%s2564_s1 + $0x2f0] sm:$0xff] }
  0x3d   :  { %1832 = vmatpush3.bf16.msra.mxu0 %v1829_v8  ;;  %v1132_v8 = vld [vmem:[%s2564_s1 + $0x238] sm:$0xff] }
  0x3e   :  { %1834 = vmatprep.subr.bf16.mxu0 %v1833_v24 }
  0x41   :  { %1836 = vmatpush3.bf16.msra.mxu0 %v1833_v24 }
  0x42   :  { %1870 = vmatprep.subr.bf16.mxu0 %v1869_v1 }
  0xf7   :  { %v1433_v10 = vpop.f32.mrb[0].mxu0 }
  0xf8   :  { %v113_v11 = vadd.f32 %v1433_v10, %v1070_v9  ;;  %v107_v12 = vpop.f32.mrb[1].mxu0  ;;  %v1133_v10 = vld [vmem:[%s2564_s1 + $0x240] sm:$0xff] }
  0xf9   :  { %v108_v13 = vadd.f32 %v1070_v9, %v107_v12 }
  0xfa   :  { %v127_v16 = vmax.f32 %v113_v11, 0.0  ;;  %v1134_v11 = vld [vmem:[%s2564_s1 + $0x248] sm:$0xff] }
  0xfb   :  { %v1436_v14 = vpop.f32.mrb[2].mxu0  ;;  %v126_v15 = vmax.f32 %v108_v13, 0.0  ;;  %v1885_v12 = vpack.c.bf16 %v1134_v11, %v1133_v10  ;;  %v1135_v13 = vld [vmem:[%s2564_s1 + $0x250] sm:$0xff] }
  0xfc   :  { %v123_v17 = vadd.f32 %v1436_v14, %v1070_v9  ;;  %v117_v18 = vpop.f32.mrb[3].mxu0  ;;  %v1136_v14 = vld [vmem:[%s2564_s1 + $0x258] sm:$0xff]  ;;  %v1163_v10 = vld [vmem:[%s2564_s1 + $0x310] sm:$0xff] }
  0xfd   :  { %v118_v19 = vadd.f32 %v1070_v9, %v117_v18  ;;  %1469 = vmatprep.mubr.f32.mxu1 %v126_v15  ;;  %v1881_v9 = vpack.c.bf16 %v1132_v8, %v1131_v7  ;;  %v1889_v15 = vpack.c.bf16 %v1136_v14, %v1135_v13  ;;  %v1161_v8 = vld [vmem:[%s2564_s1 + $0x300] sm:$0xff] }
  0xfe   :  { %1470 = vmatmul.mubr.f32.vlgmr.msra.gmra.mrb[0].mxu1 %v127_v16  ;;  %v129_v21 = vmax.f32 %v123_v17, 0.0  ;;  %v1137_v16 = vld [vmem:[%s2564_s1 + $0x260] sm:$0xff]  ;;  %v1138_v17 = vld [vmem:[%s2564_s1 + $0x268] sm:$0xff] }
  0xff   :  { %v128_v20 = vmax.f32 %v118_v19, 0.0  ;;  %1840 = vmatpush3.bf16.msra.mxu1 %v1837_v28  ;;  %v1893_v18 = vpack.c.bf16 %v1138_v17, %v1137_v16  ;;  %v1106_v19 = vld [vmem:[%s2566_s2 + $0x2] ss:$0 sm:$0xff]  ;;  %v1167_v17 = vld [vmem:[%s2564_s1 + $0x330] sm:$0xff] }
 0x100   :  { %1842 = vmatprep.subr.bf16.mxu1 %v1841_v30  ;;  %v1165_v14 = vld [vmem:[%s2564_s1 + $0x320] sm:$0xff] }
 0x101   :  { %1472 = vmatprep.mubr.f32.mxu1 %v128_v20 }
 0x102   :  { %1473 = vmatmul.mubr.f32.gmra.mrb[2].mxu1 %v129_v21 }
 0x103   :  { %1844 = vmatpush3.bf16.msra.mxu1 %v1841_v30 }
 0x104   :  { %1846 = vmatprep.subr.bf16.mxu1 %v1845_v33 }
 0x107   :  { %1848 = vmatpush3.bf16.msra.mxu1 %v1845_v33  ;;  %v1140_v33 = vld [vmem:[%s2564_s1 + $0x278] sm:$0xff] }
 0x108   :  { %1850 = vmatprep.subr.bf16.mxu1 %v1849_v36  ;;  %v1897_v34 = vpack.c.bf16 %v1140_v33, %v1139_v32 }
 0x10b   :  { %1852 = vmatpush3.bf16.msra.mxu1 %v1849_v36  ;;  %v1144_v36 = vld [vmem:[%s2564_s1 + $0x288] sm:$0xff] }
 0x10c   :  { %1854 = vmatprep.subr.bf16.mxu1 %v1853_v39  ;;  %v1901_v38 = vpack.c.bf16 %v1144_v36, %v1143_v35 }
 0x10f   :  { %1856 = vmatpush3.bf16.msra.mxu1 %v1853_v39  ;;  %v1146_v39 = vld [vmem:[%s2564_s1 + $0x298] sm:$0xff] }
 0x110   :  { %1858 = vmatprep.subr.bf16.mxu1 %v1857_v42  ;;  %v1905_v40 = vpack.c.bf16 %v1146_v39, %v1145_v37 }
 0x113   :  { %1860 = vmatpush3.bf16.msra.mxu1 %v1857_v42  ;;  %v1148_v42 = vld [vmem:[%s2564_s1 + $0x2a8] sm:$0xff] }
 0x114   :  { %1862 = vmatprep.subr.bf16.mxu1 %v1861_v45  ;;  %v1909_v43 = vpack.c.bf16 %v1148_v42, %v1147_v41  ;;  %v1175_v42 = vld [vmem:[%s2564_s1 + $0x370] sm:$0xff] }
 0x117   :  { %1864 = vmatpush3.bf16.msra.mxu1 %v1861_v45  ;;  %v1150_v45 = vld [vmem:[%s2564_s1 + $0x2b8] sm:$0xff] }
 0x118   :  { %1866 = vmatprep.subr.bf16.mxu1 %v1865_v61 }
 0x11b   :  { %1868 = vmatpush3.bf16.msra.mxu1 %v1865_v61 }
 0x11c   :  { %1902 = vmatprep.subr.bf16.mxu1 %v1901_v38 }
 0x1d1   :  { %v1471_v47 = vpop.f32.mrb[0].mxu1 }
 0x1d2   :  { %v227_v48 = vadd.f32 %v1471_v47, %v1088_v46  ;;  %v221_v49 = vpop.f32.mrb[1].mxu1  ;;  %v1151_v47 = vld [vmem:[%s2564_s1 + $0x2c0] sm:$0xff] }
 0x1d3   :  { %v222_v50 = vadd.f32 %v1088_v46, %v221_v49 }
 0x1d4   :  { %v241_v53 = vmax.f32 %v227_v48, 0.0  ;;  %v1152_v48 = vld [vmem:[%s2564_s1 + $0x2c8] sm:$0xff] }
 0x1d5   :  { %v240_v51 = vmax.f32 %v222_v50, 0.0  ;;  %v1474_v52 = vpop.f32.mrb[2].mxu1  ;;  %v1917_v49 = vpack.c.bf16 %v1152_v48, %v1151_v47  ;;  %v1153_v50 = vld [vmem:[%s2564_s1 + $0x2d0] sm:$0xff] }
 0x1d6   :  { %v237_v54 = vadd.f32 %v1474_v52, %v1088_v46  ;;  %v231_v55 = vpop.f32.mrb[3].mxu1  ;;  %v1181_v47 = vld [vmem:[%s2564_s1 + $0x390] sm:$0xff] }
 0x1d7   :  { %v232_v56 = vadd.f32 %v1088_v46, %v231_v55  ;;  %1507 = vmatprep.mubr.f32.mxu0 %v240_v51  ;;  %v1913_v46 = vpack.c.bf16 %v1150_v45, %v1149_v44  ;;  %v1154_v51 = vld [vmem:[%s2564_s1 + $0x2d8] sm:$0xff]  ;;  %v1179_v45 = vld [vmem:[%s2564_s1 + $0x380] sm:$0xff] }
 0x1d8   :  { %1508 = vmatmul.mubr.f32.vlgmr.msra.gmra.mrb[4].mxu0 %v241_v53  ;;  %v243_v58 = vmax.f32 %v237_v54, 0.0  ;;  %v1921_v52 = vpack.c.bf16 %v1154_v51, %v1153_v50  ;;  %v1155_v53 = vld [vmem:[%s2564_s1 + $0x2e0] sm:$0xff]  ;;  %v1156_v54 = vld [vmem:[%s2564_s1 + $0x2e8] sm:$0xff] }
 0x1d9   :  { %v242_v57 = vmax.f32 %v232_v56, 0.0  ;;  %1872 = vmatpush3.bf16.msra.mxu0 %v1869_v1  ;;  %v1925_v55 = vpack.c.bf16 %v1156_v54, %v1155_v53  ;;  %v1124_v56 = vld [vmem:[%s2566_s2 + $0x3] ss:$0 sm:$0xff]  ;;  %v1185_v54 = vld [vmem:[%s2564_s1 + $0x3b0] sm:$0xff] }
 0x1da   :  { %1874 = vmatprep.subr.bf16.mxu0 %v1873_v3  ;;  %v1183_v51 = vld [vmem:[%s2564_s1 + $0x3a0] sm:$0xff] }
 0x1db   :  { %1510 = vmatprep.mubr.f32.mxu0 %v242_v57 }
 0x1dc   :  { %1511 = vmatmul.mubr.f32.gmra.mrb[6].mxu0 %v243_v58 }
 0x1dd   :  { %1876 = vmatpush3.bf16.msra.mxu0 %v1873_v3 }
 0x1de   :  { %1878 = vmatprep.subr.bf16.mxu0 %v1877_v6 }
 0x1e1   :  { %1880 = vmatpush3.bf16.msra.mxu0 %v1877_v6  ;;  %v1158_v6 = vld [vmem:[%s2564_s1 + $0x2f8] sm:$0xff] }
 0x1e2   :  { %1882 = vmatprep.subr.bf16.mxu0 %v1881_v9  ;;  %v1929_v7 = vpack.c.bf16 %v1158_v6, %v1157_v5 }
 0x1e5   :  { %1884 = vmatpush3.bf16.msra.mxu0 %v1881_v9  ;;  %v1162_v9 = vld [vmem:[%s2564_s1 + $0x308] sm:$0xff] }
 0x1e6   :  { %1886 = vmatprep.subr.bf16.mxu0 %v1885_v12  ;;  %v1933_v11 = vpack.c.bf16 %v1162_v9, %v1161_v8 }
 0x1e9   :  { %1888 = vmatpush3.bf16.msra.mxu0 %v1885_v12  ;;  %v1164_v12 = vld [vmem:[%s2564_s1 + $0x318] sm:$0xff] }
 0x1ea   :  { %1890 = vmatprep.subr.bf16.mxu0 %v1889_v15  ;;  %v1937_v13 = vpack.c.bf16 %v1164_v12, %v1163_v10 }
 0x1ed   :  { %1892 = vmatpush3.bf16.msra.mxu0 %v1889_v15  ;;  %v1166_v15 = vld [vmem:[%s2564_s1 + $0x328] sm:$0xff] }
 0x1ee   :  { %1894 = vmatprep.subr.bf16.mxu0 %v1893_v18  ;;  %v1941_v16 = vpack.c.bf16 %v1166_v15, %v1165_v14  ;;  %v1193_v15 = vld [vmem:[%s2564_s1 + $0x3f0] sm:$0xff] }
 0x1f1   :  { %1896 = vmatpush3.bf16.msra.mxu0 %v1893_v18  ;;  %v1168_v18 = vld [vmem:[%s2564_s1 + $0x338] sm:$0xff] }
 0x1f2   :  { %1898 = vmatprep.subr.bf16.mxu0 %v1897_v34 }
 0x1f5   :  { %1900 = vmatpush3.bf16.msra.mxu0 %v1897_v34 }
 0x1f6   :  { %1934 = vmatprep.subr.bf16.mxu0 %v1933_v11 }
 0x2ab   :  { %v1509_v20 = vpop.f32.mrb[4].mxu0 }
 0x2ac   :  { %v341_v21 = vadd.f32 %v1509_v20, %v1106_v19  ;;  %v335_v22 = vpop.f32.mrb[5].mxu0  ;;  %v1169_v20 = vld [vmem:[%s2564_s1 + $0x340] sm:$0xff] }
 0x2ad   :  { %v336_v23 = vadd.f32 %v1106_v19, %v335_v22 }
 0x2ae   :  { %v355_v26 = vmax.f32 %v341_v21, 0.0  ;;  %v1170_v21 = vld [vmem:[%s2564_s1 + $0x348] sm:$0xff] }
 0x2af   :  { %v354_v24 = vmax.f32 %v336_v23, 0.0  ;;  %v1512_v25 = vpop.f32.mrb[6].mxu0  ;;  %v1949_v22 = vpack.c.bf16 %v1170_v21, %v1169_v20  ;;  %v1171_v23 = vld [vmem:[%s2564_s1 + $0x350] sm:$0xff] }
 0x2b0   :  { %v351_v27 = vadd.f32 %v1512_v25, %v1106_v19  ;;  %v345_v28 = vpop.f32.mrb[7].mxu0  ;;  %v1199_v20 = vld [vmem:[%s2564_s1 + $0x410] sm:$0xff] }
 0x2b1   :  { %v346_v29 = vadd.f32 %v1106_v19, %v345_v28  ;;  %1545 = vmatprep.mubr.f32.mxu1 %v354_v24  ;;  %v1945_v19 = vpack.c.bf16 %v1168_v18, %v1167_v17  ;;  %v1172_v24 = vld [vmem:[%s2564_s1 + $0x358] sm:$0xff]  ;;  %v1197_v18 = vld [vmem:[%s2564_s1 + $0x400] sm:$0xff] }
 0x2b2   :  { %1546 = vmatmul.mubr.f32.vlgmr.msra.gmra.mrb[4].mxu1 %v355_v26  ;;  %v357_v31 = vmax.f32 %v351_v27, 0.0  ;;  %v1953_v25 = vpack.c.bf16 %v1172_v24, %v1171_v23  ;;  %v1173_v26 = vld [vmem:[%s2564_s1 + $0x360] sm:$0xff]  ;;  %v1174_v27 = vld [vmem:[%s2564_s1 + $0x368] sm:$0xff] }
 0x2b3   :  { %v356_v30 = vmax.f32 %v346_v29, 0.0  ;;  %1904 = vmatpush3.bf16.msra.mxu1 %v1901_v38  ;;  %v1957_v28 = vpack.c.bf16 %v1174_v27, %v1173_v26  ;;  %v1142_v29 = vld [vmem:[%s2566_s2 + $0x4] ss:$0 sm:$0xff]  ;;  %v1203_v27 = vld [vmem:[%s2564_s1 + $0x430] sm:$0xff] }
 0x2b4   :  { %1906 = vmatprep.subr.bf16.mxu1 %v1905_v40  ;;  %v1201_v24 = vld [vmem:[%s2564_s1 + $0x420] sm:$0xff] }
 0x2b5   :  { %1548 = vmatprep.mubr.f32.mxu1 %v356_v30 }
 0x2b6   :  { %1549 = vmatmul.mubr.f32.gmra.mrb[6].mxu1 %v357_v31 }
 0x2b7   :  { %1908 = vmatpush3.bf16.msra.mxu1 %v1905_v40 }
 0x2b8   :  { %1910 = vmatprep.subr.bf16.mxu1 %v1909_v43 }
 0x2bb   :  { %1912 = vmatpush3.bf16.msra.mxu1 %v1909_v43  ;;  %v1176_v43 = vld [vmem:[%s2564_s1 + $0x378] sm:$0xff] }
 0x2bc   :  { %1914 = vmatprep.subr.bf16.mxu1 %v1913_v46  ;;  %v1961_v44 = vpack.c.bf16 %v1176_v43, %v1175_v42 }
 0x2bf   :  { %1916 = vmatpush3.bf16.msra.mxu1 %v1913_v46  ;;  %v1180_v46 = vld [vmem:[%s2564_s1 + $0x388] sm:$0xff] }
 0x2c0   :  { %1918 = vmatprep.subr.bf16.mxu1 %v1917_v49  ;;  %v1965_v48 = vpack.c.bf16 %v1180_v46, %v1179_v45 }
 0x2c3   :  { %1920 = vmatpush3.bf16.msra.mxu1 %v1917_v49  ;;  %v1182_v49 = vld [vmem:[%s2564_s1 + $0x398] sm:$0xff] }
 0x2c4   :  { %1922 = vmatprep.subr.bf16.mxu1 %v1921_v52  ;;  %v1969_v50 = vpack.c.bf16 %v1182_v49, %v1181_v47 }
 0x2c7   :  { %1924 = vmatpush3.bf16.msra.mxu1 %v1921_v52  ;;  %v1184_v52 = vld [vmem:[%s2564_s1 + $0x3a8] sm:$0xff] }
 0x2c8   :  { %1926 = vmatprep.subr.bf16.mxu1 %v1925_v55  ;;  %v1973_v53 = vpack.c.bf16 %v1184_v52, %v1183_v51  ;;  %v1211_v52 = vld [vmem:[%s2564_s1 + $0x470] sm:$0xff] }
 0x2cb   :  { %1928 = vmatpush3.bf16.msra.mxu1 %v1925_v55  ;;  %v1186_v55 = vld [vmem:[%s2564_s1 + $0x3b8] sm:$0xff] }
 0x2cc   :  { %1930 = vmatprep.subr.bf16.mxu1 %v1929_v7 }
 0x2cf   :  { %1932 = vmatpush3.bf16.msra.mxu1 %v1929_v7 }
 0x2d0   :  { %1966 = vmatprep.subr.bf16.mxu1 %v1965_v48 }
 0x385   :  { %v1547_v57 = vpop.f32.mrb[4].mxu1 }
 0x386   :  { %v455_v58 = vadd.f32 %v1547_v57, %v1124_v56  ;;  %v449_v59 = vpop.f32.mrb[5].mxu1  ;;  %v1187_v57 = vld [vmem:[%s2564_s1 + $0x3c0] sm:$0xff] }
 0x387   :  { %v450_v60 = vadd.f32 %v1124_v56, %v449_v59 }
 0x388   :  { %v469_v63 = vmax.f32 %v455_v58, 0.0  ;;  %v1188_v58 = vld [vmem:[%s2564_s1 + $0x3c8] sm:$0xff] }
 0x389   :  { %v468_v61 = vmax.f32 %v450_v60, 0.0  ;;  %v1550_v62 = vpop.f32.mrb[6].mxu1  ;;  %v1981_v59 = vpack.c.bf16 %v1188_v58, %v1187_v57  ;;  %v1189_v60 = vld [vmem:[%s2564_s1 + $0x3d0] sm:$0xff] }
 0x38a   :  { %v465_v0 = vadd.f32 %v1550_v62, %v1124_v56  ;;  %v459_v1 = vpop.f32.mrb[7].mxu1 }
 0x38b   :  { %v460_v2 = vadd.f32 %v1124_v56, %v459_v1  ;;  %1583 = vmatprep.mubr.f32.mxu0 %v468_v61  ;;  %v1977_v56 = vpack.c.bf16 %v1186_v55, %v1185_v54  ;;  %v1190_v61 = vld [vmem:[%s2564_s1 + $0x3d8] sm:$0xff]  ;;  %v1196_v55 = vld [vmem:[%s2566_s2 + $0x7] ss:$0 sm:$0xff] }
 0x38c   :  { %1584 = vmatmul.mubr.f32.vlgmr.msra.gmra.mrb[8].mxu0 %v469_v63  ;;  %v471_v4 = vmax.f32 %v465_v0, 0.0  ;;  %v1985_v62 = vpack.c.bf16 %v1190_v61, %v1189_v60  ;;  %v1191_v63 = vld [vmem:[%s2564_s1 + $0x3e0] sm:$0xff]  ;;  %v1192_v0 = vld [vmem:[%s2564_s1 + $0x3e8] sm:$0xff] }
 0x38d   :  { %v470_v3 = vmax.f32 %v460_v2, 0.0  ;;  %1936 = vmatpush3.bf16.msra.mxu0 %v1933_v11  ;;  %v1989_v1 = vpack.c.bf16 %v1192_v0, %v1191_v63  ;;  %v1160_v2 = vld [vmem:[%s2566_s2 + $0x5] ss:$0 sm:$0xff] }
 0x38e   :  { %1938 = vmatprep.subr.bf16.mxu0 %v1937_v13 }
 0x38f   :  { %1586 = vmatprep.mubr.f32.mxu0 %v470_v3 }
 0x390   :  { %1587 = vmatmul.mubr.f32.gmra.mrb[10].mxu0 %v471_v4 }
 0x391   :  { %1940 = vmatpush3.bf16.msra.mxu0 %v1937_v13 }
 0x392   :  { %1942 = vmatprep.subr.bf16.mxu0 %v1941_v16 }
 0x395   :  { %1944 = vmatpush3.bf16.msra.mxu0 %v1941_v16  ;;  %v1194_v16 = vld [vmem:[%s2564_s1 + $0x3f8] sm:$0xff] }
 0x396   :  { %1946 = vmatprep.subr.bf16.mxu0 %v1945_v19  ;;  %v1993_v17 = vpack.c.bf16 %v1194_v16, %v1193_v15 }
 0x399   :  { %1948 = vmatpush3.bf16.msra.mxu0 %v1945_v19  ;;  %v1198_v19 = vld [vmem:[%s2564_s1 + $0x408] sm:$0xff] }
 0x39a   :  { %1950 = vmatprep.subr.bf16.mxu0 %v1949_v22  ;;  %v1997_v21 = vpack.c.bf16 %v1198_v19, %v1197_v18 }
 0x39d   :  { %1952 = vmatpush3.bf16.msra.mxu0 %v1949_v22  ;;  %v1200_v22 = vld [vmem:[%s2564_s1 + $0x418] sm:$0xff] }
 0x39e   :  { %1954 = vmatprep.subr.bf16.mxu0 %v1953_v25  ;;  %v2001_v23 = vpack.c.bf16 %v1200_v22, %v1199_v20 }
 0x3a1   :  { %1956 = vmatpush3.bf16.msra.mxu0 %v1953_v25  ;;  %v1202_v25 = vld [vmem:[%s2564_s1 + $0x428] sm:$0xff] }
 0x3a2   :  { %1958 = vmatprep.subr.bf16.mxu0 %v1957_v28  ;;  %v2005_v26 = vpack.c.bf16 %v1202_v25, %v1201_v24 }
 0x3a5   :  { %1960 = vmatpush3.bf16.msra.mxu0 %v1957_v28  ;;  %v1204_v28 = vld [vmem:[%s2564_s1 + $0x438] sm:$0xff] }
 0x3a6   :  { %1962 = vmatprep.subr.bf16.mxu0 %v1961_v44 }
 0x3a9   :  { %1964 = vmatpush3.bf16.msra.mxu0 %v1961_v44 }
 0x3aa   :  { %1998 = vmatprep.subr.bf16.mxu0 %v1997_v21 }
 0x45f   :  { %v1585_v30 = vpop.f32.mrb[8].mxu0 }
 0x460   :  { %v569_v31 = vadd.f32 %v1585_v30, %v1142_v29  ;;  %v563_v32 = vpop.f32.mrb[9].mxu0  ;;  %v1205_v30 = vld [vmem:[%s2564_s1 + $0x440] sm:$0xff] }
 0x461   :  { %v564_v33 = vadd.f32 %v1142_v29, %v563_v32 }
 0x462   :  { %v583_v36 = vmax.f32 %v569_v31, 0.0  ;;  %v1206_v31 = vld [vmem:[%s2564_s1 + $0x448] sm:$0xff] }
 0x463   :  { %v582_v34 = vmax.f32 %v564_v33, 0.0  ;;  %v1588_v35 = vpop.f32.mrb[10].mxu0  ;;  %v2013_v32 = vpack.c.bf16 %v1206_v31, %v1205_v30  ;;  %v1207_v33 = vld [vmem:[%s2564_s1 + $0x450] sm:$0xff] }
 0x464   :  { %v579_v37 = vadd.f32 %v1588_v35, %v1142_v29  ;;  %v573_v38 = vpop.f32.mrb[11].mxu0 }
 0x465   :  { %v574_v39 = vadd.f32 %v1142_v29, %v573_v38  ;;  %1621 = vmatprep.mubr.f32.mxu1 %v582_v34  ;;  %v2009_v29 = vpack.c.bf16 %v1204_v28, %v1203_v27  ;;  %v1208_v34 = vld [vmem:[%s2564_s1 + $0x458] sm:$0xff] }
 0x466   :  { %1622 = vmatmul.mubr.f32.vlgmr.msra.gmra.mrb[8].mxu1 %v583_v36  ;;  %v585_v41 = vmax.f32 %v579_v37, 0.0  ;;  %v2017_v35 = vpack.c.bf16 %v1208_v34, %v1207_v33  ;;  %v1209_v36 = vld [vmem:[%s2564_s1 + $0x460] sm:$0xff]  ;;  %v1210_v37 = vld [vmem:[%s2564_s1 + $0x468] sm:$0xff] }
 0x467   :  { %v584_v40 = vmax.f32 %v574_v39, 0.0  ;;  %1968 = vmatpush3.bf16.msra.mxu1 %v1965_v48  ;;  %v2021_v38 = vpack.c.bf16 %v1210_v37, %v1209_v36  ;;  %v1178_v39 = vld [vmem:[%s2566_s2 + $0x6] ss:$0 sm:$0xff] }
 0x468   :  { %1970 = vmatprep.subr.bf16.mxu1 %v1969_v50 }
 0x469   :  { %1624 = vmatprep.mubr.f32.mxu1 %v584_v40 }
 0x46a   :  { %1625 = vmatmul.mubr.f32.gmra.mrb[10].mxu1 %v585_v41 }
 0x46b   :  { %1972 = vmatpush3.bf16.msra.mxu1 %v1969_v50 }
 0x46c   :  { %1974 = vmatprep.subr.bf16.mxu1 %v1973_v53 }
 0x46f   :  { %1976 = vmatpush3.bf16.msra.mxu1 %v1973_v53  ;;  %v1212_v53 = vld [vmem:[%s2564_s1 + $0x478] sm:$0xff] }
 0x470   :  { %1978 = vmatprep.subr.bf16.mxu1 %v1977_v56  ;;  %v2025_v54 = vpack.c.bf16 %v1212_v53, %v1211_v52 }
 0x473   :  { %1980 = vmatpush3.bf16.msra.mxu1 %v1977_v56 }
 0x474   :  { %1982 = vmatprep.subr.bf16.mxu1 %v1981_v59 }
 0x477   :  { %1984 = vmatpush3.bf16.msra.mxu1 %v1981_v59 }
 0x478   :  { %1986 = vmatprep.subr.bf16.mxu1 %v1985_v62 }
 0x47b   :  { %1988 = vmatpush3.bf16.msra.mxu1 %v1985_v62 }
 0x47c   :  { %1990 = vmatprep.subr.bf16.mxu1 %v1989_v1 }
 0x47f   :  { %1992 = vmatpush3.bf16.msra.mxu1 %v1989_v1 }
 0x480   :  { %1994 = vmatprep.subr.bf16.mxu1 %v1993_v17 }
 0x483   :  { %1996 = vmatpush3.bf16.msra.mxu1 %v1993_v17 }
 0x484   :  { %2029 = vmatprep.subr.bf16.mxu1 %v1997_v21 }
 0x539   :  { %v1623_v3 = vpop.f32.mrb[8].mxu1 }
 0x53a   :  { %v683_v4 = vadd.f32 %v1623_v3, %v1160_v2  ;;  %v677_v5 = vpop.f32.mrb[9].mxu1 }
 0x53b   :  { %v678_v6 = vadd.f32 %v1160_v2, %v677_v5 }
 0x53c   :  { %v697_v9 = vmax.f32 %v683_v4, 0.0  ;;  %v1214_v4 = vld [vmem:[%s2566_s2 + $0x8] ss:$0 sm:$0xff] }
 0x53d   :  { %v696_v7 = vmax.f32 %v678_v6, 0.0  ;;  %v1626_v8 = vpop.f32.mrb[10].mxu1 }
 0x53e   :  { %v693_v10 = vadd.f32 %v1626_v8, %v1160_v2  ;;  %v687_v11 = vpop.f32.mrb[11].mxu1 }
 0x53f   :  { %v688_v12 = vadd.f32 %v1160_v2, %v687_v11  ;;  %1659 = vmatprep.mubr.f32.mxu0 %v696_v7 }
 0x540   :  { %1660 = vmatmul.mubr.f32.vlgmr.msra.gmra.mrb[12].mxu0 %v697_v9  ;;  %v699_v14 = vmax.f32 %v693_v10, 0.0 }
 0x541   :  { %v698_v13 = vmax.f32 %v688_v12, 0.0  ;;  %2000 = vmatpush3.bf16.msra.mxu0 %v1997_v21 }
 0x542   :  { %2002 = vmatprep.subr.bf16.mxu0 %v2001_v23 }
 0x543   :  { %1662 = vmatprep.mubr.f32.mxu0 %v698_v13 }
 0x544   :  { %1663 = vmatmul.mubr.f32.gmra.mrb[14].mxu0 %v699_v14 }
 0x545   :  { %2004 = vmatpush3.bf16.msra.mxu0 %v2001_v23 }
 0x546   :  { %2006 = vmatprep.subr.bf16.mxu0 %v2005_v26 }
 0x549   :  { %2008 = vmatpush3.bf16.msra.mxu0 %v2005_v26 }
 0x54a   :  { %2010 = vmatprep.subr.bf16.mxu0 %v2009_v29 }
 0x54d   :  { %2012 = vmatpush3.bf16.msra.mxu0 %v2009_v29 }
 0x54e   :  { %2014 = vmatprep.subr.bf16.mxu0 %v2013_v32 }
 0x551   :  { %2016 = vmatpush3.bf16.msra.mxu0 %v2013_v32 }
 0x552   :  { %2018 = vmatprep.subr.bf16.mxu0 %v2017_v35 }
 0x555   :  { %2020 = vmatpush3.bf16.msra.mxu0 %v2017_v35 }
 0x556   :  { %2022 = vmatprep.subr.bf16.mxu0 %v2021_v38 }
 0x559   :  { %2024 = vmatpush3.bf16.msra.mxu0 %v2021_v38 }
 0x55a   :  { %2026 = vmatprep.subr.bf16.mxu0 %v2025_v54 }
 0x55d   :  { %2028 = vmatpush3.bf16.msra.mxu0 %v2025_v54 }
 0x613   :  { %v1661_v40 = vpop.f32.mrb[12].mxu0 }
 0x614   :  { %v797_v41 = vadd.f32 %v1661_v40, %v1178_v39  ;;  %v791_v42 = vpop.f32.mrb[13].mxu0 }
 0x615   :  { %v792_v43 = vadd.f32 %v1178_v39, %v791_v42 }
 0x616   :  { %v811_v46 = vmax.f32 %v797_v41, 0.0 }
 0x617   :  { %v810_v44 = vmax.f32 %v792_v43, 0.0  ;;  %v1664_v45 = vpop.f32.mrb[14].mxu0 }
 0x618   :  { %v807_v47 = vadd.f32 %v1664_v45, %v1178_v39  ;;  %v801_v48 = vpop.f32.mrb[15].mxu0 }
 0x619   :  { %v802_v49 = vadd.f32 %v1178_v39, %v801_v48  ;;  %1697 = vmatprep.mubr.f32.mxu1 %v810_v44 }
 0x61a   :  { %1698 = vmatmul.mubr.f32.vlgmr.msra.gmra.mrb[12].mxu1 %v811_v46  ;;  %v813_v51 = vmax.f32 %v807_v47, 0.0 }
 0x61b   :  { %v812_v50 = vmax.f32 %v802_v49, 0.0  ;;  %2037 = vmatpush3.bf16.msra.mxu1 %v1997_v21 }
 0x61c   :  { %2030 = vmatprep.subr.bf16.mxu1 %v2001_v23 }
 0x61d   :  { %1700 = vmatprep.mubr.f32.mxu1 %v812_v50 }
 0x61e   :  { %1701 = vmatmul.mubr.f32.gmra.mrb[14].mxu1 %v813_v51 }
 0x61f   :  { %2038 = vmatpush3.bf16.msra.mxu1 %v2001_v23 }
 0x620   :  { %2031 = vmatprep.subr.bf16.mxu1 %v2005_v26 }
 0x623   :  { %2039 = vmatpush3.bf16.msra.mxu1 %v2005_v26 }
 0x624   :  { %2032 = vmatprep.subr.bf16.mxu1 %v2009_v29 }
 0x627   :  { %2040 = vmatpush3.bf16.msra.mxu1 %v2009_v29 }
 0x628   :  { %2033 = vmatprep.subr.bf16.mxu1 %v2013_v32 }
 0x62b   :  { %2041 = vmatpush3.bf16.msra.mxu1 %v2013_v32 }
 0x62c   :  { %2034 = vmatprep.subr.bf16.mxu1 %v2017_v35 }
 0x62f   :  { %2042 = vmatpush3.bf16.msra.mxu1 %v2017_v35 }
 0x630   :  { %2035 = vmatprep.subr.bf16.mxu1 %v2021_v38 }
 0x633   :  { %2043 = vmatpush3.bf16.msra.mxu1 %v2021_v38 }
 0x634   :  { %2036 = vmatprep.subr.bf16.mxu1 %v2025_v54 }
 0x637   :  { %2044 = vmatpush3.bf16.msra.mxu1 %v2025_v54 }
 0x6ed   :  { %v1699_v56 = vpop.f32.mrb[12].mxu1 }
 0x6ee   :  { %v911_v57 = vadd.f32 %v1699_v56, %v1196_v55  ;;  %v905_v58 = vpop.f32.mrb[13].mxu1 }
 0x6ef   :  { %v906_v59 = vadd.f32 %v1196_v55, %v905_v58 }
 0x6f0   :  { %v925_v62 = vmax.f32 %v911_v57, 0.0 }
 0x6f1   :  { %v924_v60 = vmax.f32 %v906_v59, 0.0  ;;  %v1702_v61 = vpop.f32.mrb[14].mxu1 }
 0x6f2   :  { %v921_v63 = vadd.f32 %v1702_v61, %v1196_v55  ;;  %v915_v0 = vpop.f32.mrb[15].mxu1 }
 0x6f3   :  { %v916_v1 = vadd.f32 %v1196_v55, %v915_v0  ;;  %1735 = vmatprep.mubr.f32.mxu0 %v924_v60 }
 0x6f4   :  { %1736 = vmatmul.mubr.f32.vlgmr.msra.gmra.mrb[16].mxu0 %v925_v62  ;;  %v927_v3 = vmax.f32 %v921_v63, 0.0 }
 0x6f5   :  { %v926_v2 = vmax.f32 %v916_v1, 0.0 }
 0x6f7   :  { %1738 = vmatprep.mubr.f32.mxu1 %v926_v2 }
 0x6f8   :  { %1739 = vmatmul.mubr.f32.vlgmr.msra.gmra.mrb[16].mxu1 %v927_v3 }
 0x7c7   :  { %v1737_v5 = vpop.f32.mrb[16].mxu0 }
 0x7c8   :  { %v1025_v6 = vadd.f32 %v1737_v5, %v1214_v4  ;;  %v1019_v7 = vpop.f32.mrb[17].mxu0 }
 0x7c9   :  { %v1020_v8 = vadd.f32 %v1214_v4, %v1019_v7 }
 0x7ca   :  { %v1216_v9 = vmul.f32 -1.442695, %v1025_v6 }
 0x7cb   :  { %v1215_v10 = vmul.f32 -1.442695, %v1020_v8  ;;  %v1740_v11 = vpop.f32.mrb[16].mxu1 }
 0x7cc   :  { %2045 = vpow2.f32 %v1216_v9  ;;  %v1035_v12 = vadd.f32 %v1740_v11, %v1214_v4  ;;  %v1029_v13 = vpop.f32.mrb[17].mxu1 }
 0x7cd   :  { %2047 = vpow2.f32 %v1215_v10  ;;  %v1030_v14 = vadd.f32 %v1214_v4, %v1029_v13 }
 0x7ce   :  { %v1218_v15 = vmul.f32 -1.442695, %v1035_v12 }
 0x7cf   :  { %v1217_v16 = vmul.f32 -1.442695, %v1030_v14 }
 0x7d0   :  { %2049 = vpow2.f32 %v1218_v15 }
 0x7d1   :  { %2051 = vpow2.f32 %v1217_v16 }
 0x7d6   :  { %v2046_v17 = vpop.eup %2045 }
 0x7d7   :  { %v2048_v18 = vpop.eup %2047  ;;  %v1051_v19 = vadd.f32 1.0, %v2046_v17 }
 0x7d8   :  { %v1050_v20 = vadd.f32 1.0, %v2048_v18 }
 0x7d9   :  { %2053 = vrcp.f32 %v1051_v19 }
 0x7da   :  { %v2050_v21 = vpop.eup %2049  ;;  %2055 = vrcp.f32 %v1050_v20 }
 0x7db   :  { %v2052_v22 = vpop.eup %2051  ;;  %v1053_v23 = vadd.f32 1.0, %v2050_v21 }
 0x7dc   :  { %v1052_v24 = vadd.f32 1.0, %v2052_v22 }
 0x7dd   :  { %2057 = vrcp.f32 %v1053_v23 }
 0x7de   :  { %2059 = vrcp.f32 %v1052_v24 }
 0x7e3   :  { %v2054_v25 = vpop.eup %2053 }
 0x7e4   :  { %v2056_v26 = vpop.eup %2055  ;;  %1063 = vst [vmem:[%s2567_s3 + $0x8] sm:$0xff] %v2054_v25 }
 0x7e5   :  { %1062 = vst [vmem:[%s2567_s3] sm:$0xff] %v2056_v26 }
 0x7e7   :  { %v2058_v27 = vpop.eup %2057 }
 0x7e8   :  { %v2060_v28 = vpop.eup %2059  ;;  %1065 = vst [vmem:[%s2567_s3 + $0x18] sm:$0xff] %v2058_v27 }
 0x7e9   :  { %1064 = vst [vmem:[%s2567_s3 + $0x10] sm:$0xff] %v2060_v28 }

</bundles_post_ra>
